<compile_context>
chip_gen: v7x
topology: tpu7x:2x2x1
jax: 0.10.0
libtpu: 0.0.40
codegen_flags: <defaults>
</compile_context>

<pallas_src>
import jax
import jax.numpy as jnp
from jax.experimental import pallas as pl
from jax.experimental.pallas import tpu as pltpu

LANES = 128
_DEFAULT_S_TILE = 512          # 512 sublane-rows * 128 lanes = 65536 batch rows / step


def _round_up(x, m):
    return (x + m - 1) // m * m


def _mlp_kernel(w1_ref, b1_ref, w2_ref, b2_ref, x_ref, o_ref):
    """x_ref: [hidden, S, 128] bf16 (VMEM); w/b refs in SMEM; o_ref: [out, S, 128] f32."""
    hidden, mid = w1_ref.shape
    out = w2_ref.shape[1]

    # Layer 1 (VPU broadcast-FMAs): h[j] = sum_k w1[k, j] * x[k] + b1[j]
    xk = x_ref[0].astype(jnp.float32)                               # [S, 128]
    hs = [w1_ref[0, j] * xk + b1_ref[0, j] for j in range(mid)]
    for k in range(1, hidden):
        xk = x_ref[k].astype(jnp.float32)
        for j in range(mid):
            hs[j] = hs[j] + w1_ref[k, j] * xk
    hs = [jnp.maximum(h, 0.0) for h in hs]                          # nn.ReLU

    # Layer 2: y[m] = sum_j w2[j, m] * h[j] + b2[m]
    for m in range(out):
        y = w2_ref[0, m] * hs[0] + b2_ref[0, m]
        for j in range(1, mid):
            y = y + w2_ref[j, m] * hs[j]
        o_ref[m] = y.astype(o_ref.dtype)


def simple_net_forward(x, w1, b1, w2, b2, *, s_tile=_DEFAULT_S_TILE):
    """x: [B, hidden]; w1: [hidden, mid]; b1: [1, mid]; w2: [mid, out]; b2: [1, out].

    Returns [B, out] float32. Weights are stored pre-transposed ([in, out]) vs.
    nn.Linear's (out, in).
    """
    B, hidden = x.shape
    mid = w1.shape[1]
    out = w2.shape[1]

    # ---- layout plumbing (wrapper-side, not in-kernel) --------------------
    # Pack batch onto (sublane, lane): [B, hidden] -> [hidden, NB_pad, 128].
    nb = pl.cdiv(B, LANES)
    s_tile = min(s_tile, _round_up(nb, 16))      # 16 = bf16 sublane packing granule
    nb_pad = _round_up(nb, s_tile)
    b_pad = nb_pad * LANES

    x_p = jnp.pad(x.astype(jnp.bfloat16), ((0, b_pad - B), (0, 0)))
    x_p = x_p.T.reshape(hidden, nb_pad, LANES)

    grid = (nb_pad // s_tile,)
    smem = pl.BlockSpec(memory_space=pltpu.MemorySpace.SMEM)

    flops = 2 * b_pad * (hidden * mid + mid * out)
    bytes_accessed = (int(x_p.size) * 2                      # bf16 activations in
                      + out * b_pad * 4                      # f32 out
                      + int(w1.size + b1.size + w2.size + b2.size) * 4)

    y_p = pl.pallas_call(
        _mlp_kernel,
        out_shape=jax.ShapeDtypeStruct((out, nb_pad, LANES), jnp.float32),
        grid=grid,
        in_specs=[smem, smem, smem, smem,
                  pl.BlockSpec((hidden, s_tile, LANES), lambda i: (0, i, 0))],
        out_specs=pl.BlockSpec((out, s_tile, LANES), lambda i: (0, i, 0)),
        compiler_params=pltpu.CompilerParams(
            dimension_semantics=("parallel",)),
        cost_estimate=pl.CostEstimate(flops=flops, transcendentals=0,
                                      bytes_accessed=bytes_accessed),
    )(w1.astype(jnp.float32), b1.astype(jnp.float32),
      w2.astype(jnp.float32), b2.astype(jnp.float32), x_p)

    # Unpack: [out, NB_pad, 128] -> [B, out].
    return y_p.reshape(out, b_pad).T[:B]


def init_params(key, hidden=10, mid=5, output=1, dtype=jnp.float32):
    """Deterministic PyTorch-style (uniform +/- 1/sqrt(fan_in)) init."""
    k1, k2, k3, k4 = jax.random.split(key, 4)
    bound1 = 1.0 / jnp.sqrt(hidden)
    bound2 = 1.0 / jnp.sqrt(mid)
    # nn.Linear stores weight as (out, in); we store transposed (in, out).
    w1 = jax.random.uniform(k1, (hidden, mid), dtype, -bound1, bound1)
    b1 = jax.random.uniform(k2, (1, mid), dtype, -bound1, bound1)
    w2 = jax.random.uniform(k3, (mid, output), dtype, -bound2, bound2)
    b2 = jax.random.uniform(k4, (1, output), dtype, -bound2, bound2)
    return w1, b1, w2, b2


if __name__ == "__main__":
    hidden, mid, output = 10, 5, 1
    batch = 8

    key = jax.random.PRNGKey(0)
    kx, kp = jax.random.split(key)
    x = jax.random.normal(kx, (batch, hidden), jnp.float32)
    w1, b1, w2, b2 = init_params(kp, hidden=hidden, mid=mid, output=output)

    y = simple_net_forward(x, w1, b1, w2, b2)
    jax.block_until_ready(y)

    # Pure-JAX reference (same bf16 input quantization as the kernel path).
    x_q = x.astype(jnp.bfloat16).astype(jnp.float32)
    y_ref = jnp.maximum(x_q @ w1 + b1, 0.0) @ w2 + b2

    assert y.shape == (batch, output), y.shape
    assert jnp.allclose(y, y_ref, atol=1e-4, rtol=1e-4), float(jnp.max(jnp.abs(y - y_ref)))

    print("KERNEL_OK")
</pallas_src>

<mosaic_0001>
module attributes {stable_mosaic.version = 11 : i64} {
  func.func @_mlp_kernel(%arg0: i32, %arg1: memref<10x5xf32, #tpu.memory_space<smem>>, %arg2: memref<1x5xf32, #tpu.memory_space<smem>>, %arg3: memref<5x1xf32, #tpu.memory_space<smem>>, %arg4: memref<1x1xf32, #tpu.memory_space<smem>>, %arg5: memref<10x16x128xbf16, #tpu.memory_space<vmem>>, %arg6: memref<1x16x128xf32, #tpu.memory_space<vmem>>) attributes {dimension_semantics = [#tpu.dimension_semantics<parallel>], iteration_bounds = array<i64: 1>, scalar_prefetch = 0 : i64, scratch_operands = 0 : i64, tpu.core_type = #tpu.core_type<tc>, window_params = [{transform_indices = @transform_0, window_bounds = array<i64: 10, 5>}, {transform_indices = @transform_1, window_bounds = array<i64: 1, 5>}, {transform_indices = @transform_2, window_bounds = array<i64: 5, 1>}, {transform_indices = @transform_3, window_bounds = array<i64: 1, 1>}, {transform_indices = @transform_4, window_bounds = array<i64: 10, 16, 128>}, {transform_indices = @transform_5, window_bounds = array<i64: 1, 16, 128>}]} {
    %c0 = arith.constant 0 : index
    %c0_0 = arith.constant 0 : index
    %c0_1 = arith.constant 0 : index
    %0 = vector.load %arg5[%c0, %c0_0, %c0_1] : memref<10x16x128xbf16, #tpu.memory_space<vmem>>, vector<1x16x128xbf16>
    %1 = vector.shape_cast %0 : vector<1x16x128xbf16> to vector<16x128xbf16>
    %2 = arith.extf %1 : vector<16x128xbf16> to vector<16x128xf32>
    %c0_2 = arith.constant 0 : index
    %c0_3 = arith.constant 0 : index
    %3 = memref.load %arg1[%c0_2, %c0_3] : memref<10x5xf32, #tpu.memory_space<smem>>
    %4 = vector.broadcast %3 : f32 to vector<16x128xf32>
    %5 = arith.mulf %4, %2 : vector<16x128xf32>
    %c0_4 = arith.constant 0 : index
    %c0_5 = arith.constant 0 : index
    %6 = memref.load %arg2[%c0_4, %c0_5] : memref<1x5xf32, #tpu.memory_space<smem>>
    %7 = vector.broadcast %6 : f32 to vector<16x128xf32>
    %8 = arith.addf %5, %7 : vector<16x128xf32>
    %c0_6 = arith.constant 0 : index
    %c1 = arith.constant 1 : index
    %9 = memref.load %arg1[%c0_6, %c1] : memref<10x5xf32, #tpu.memory_space<smem>>
    %10 = vector.broadcast %9 : f32 to vector<16x128xf32>
    %11 = arith.mulf %10, %2 : vector<16x128xf32>
    %c0_7 = arith.constant 0 : index
    %c1_8 = arith.constant 1 : index
    %12 = memref.load %arg2[%c0_7, %c1_8] : memref<1x5xf32, #tpu.memory_space<smem>>
    %13 = vector.broadcast %12 : f32 to vector<16x128xf32>
    %14 = arith.addf %11, %13 : vector<16x128xf32>
    %c0_9 = arith.constant 0 : index
    %c2 = arith.constant 2 : index
    %15 = memref.load %arg1[%c0_9, %c2] : memref<10x5xf32, #tpu.memory_space<smem>>
    %16 = vector.broadcast %15 : f32 to vector<16x128xf32>
    %17 = arith.mulf %16, %2 : vector<16x128xf32>
    %c0_10 = arith.constant 0 : index
    %c2_11 = arith.constant 2 : index
    %18 = memref.load %arg2[%c0_10, %c2_11] : memref<1x5xf32, #tpu.memory_space<smem>>
    %19 = vector.broadcast %18 : f32 to vector<16x128xf32>
    %20 = arith.addf %17, %19 : vector<16x128xf32>
    %c0_12 = arith.constant 0 : index
    %c3 = arith.constant 3 : index
    %21 = memref.load %arg1[%c0_12, %c3] : memref<10x5xf32, #tpu.memory_space<smem>>
    %22 = vector.broadcast %21 : f32 to vector<16x128xf32>
    %23 = arith.mulf %22, %2 : vector<16x128xf32>
    %c0_13 = arith.constant 0 : index
    %c3_14 = arith.constant 3 : index
    %24 = memref.load %arg2[%c0_13, %c3_14] : memref<1x5xf32, #tpu.memory_space<smem>>
    %25 = vector.broadcast %24 : f32 to vector<16x128xf32>
    %26 = arith.addf %23, %25 : vector<16x128xf32>
    %c0_15 = arith.constant 0 : index
    %c4 = arith.constant 4 : index
    %27 = memref.load %arg1[%c0_15, %c4] : memref<10x5xf32, #tpu.memory_space<smem>>
    %28 = vector.broadcast %27 : f32 to vector<16x128xf32>
    %29 = arith.mulf %28, %2 : vector<16x128xf32>
    %c0_16 = arith.constant 0 : index
    %c4_17 = arith.constant 4 : index
    %30 = memref.load %arg2[%c0_16, %c4_17] : memref<1x5xf32, #tpu.memory_space<smem>>
    %31 = vector.broadcast %30 : f32 to vector<16x128xf32>
    %32 = arith.addf %29, %31 : vector<16x128xf32>
    %c1_18 = arith.constant 1 : index
    %c0_19 = arith.constant 0 : index
    %c0_20 = arith.constant 0 : index
    %33 = vector.load %arg5[%c1_18, %c0_19, %c0_20] : memref<10x16x128xbf16, #tpu.memory_space<vmem>>, vector<1x16x128xbf16>
    %34 = vector.shape_cast %33 : vector<1x16x128xbf16> to vector<16x128xbf16>
    %35 = arith.extf %34 : vector<16x128xbf16> to vector<16x128xf32>
    %c1_21 = arith.constant 1 : index
    %c0_22 = arith.constant 0 : index
    %36 = memref.load %arg1[%c1_21, %c0_22] : memref<10x5xf32, #tpu.memory_space<smem>>
    %37 = vector.broadcast %36 : f32 to vector<16x128xf32>
    %38 = arith.mulf %37, %35 : vector<16x128xf32>
    %39 = arith.addf %8, %38 : vector<16x128xf32>
    %c1_23 = arith.constant 1 : index
    %c1_24 = arith.constant 1 : index
    %40 = memref.load %arg1[%c1_23, %c1_24] : memref<10x5xf32, #tpu.memory_space<smem>>
    %41 = vector.broadcast %40 : f32 to vector<16x128xf32>
    %42 = arith.mulf %41, %35 : vector<16x128xf32>
    %43 = arith.addf %14, %42 : vector<16x128xf32>
    %c1_25 = arith.constant 1 : index
    %c2_26 = arith.constant 2 : index
    %44 = memref.load %arg1[%c1_25, %c2_26] : memref<10x5xf32, #tpu.memory_space<smem>>
    %45 = vector.broadcast %44 : f32 to vector<16x128xf32>
    %46 = arith.mulf %45, %35 : vector<16x128xf32>
    %47 = arith.addf %20, %46 : vector<16x128xf32>
    %c1_27 = arith.constant 1 : index
    %c3_28 = arith.constant 3 : index
    %48 = memref.load %arg1[%c1_27, %c3_28] : memref<10x5xf32, #tpu.memory_space<smem>>
    %49 = vector.broadcast %48 : f32 to vector<16x128xf32>
    %50 = arith.mulf %49, %35 : vector<16x128xf32>
    %51 = arith.addf %26, %50 : vector<16x128xf32>
    %c1_29 = arith.constant 1 : index
    %c4_30 = arith.constant 4 : index
    %52 = memref.load %arg1[%c1_29, %c4_30] : memref<10x5xf32, #tpu.memory_space<smem>>
    %53 = vector.broadcast %52 : f32 to vector<16x128xf32>
    %54 = arith.mulf %53, %35 : vector<16x128xf32>
    %55 = arith.addf %32, %54 : vector<16x128xf32>
    %c2_31 = arith.constant 2 : index
    %c0_32 = arith.constant 0 : index
    %c0_33 = arith.constant 0 : index
    %56 = vector.load %arg5[%c2_31, %c0_32, %c0_33] : memref<10x16x128xbf16, #tpu.memory_space<vmem>>, vector<1x16x128xbf16>
    %57 = vector.shape_cast %56 : vector<1x16x128xbf16> to vector<16x128xbf16>
    %58 = arith.extf %57 : vector<16x128xbf16> to vector<16x128xf32>
    %c2_34 = arith.constant 2 : index
    %c0_35 = arith.constant 0 : index
    %59 = memref.load %arg1[%c2_34, %c0_35] : memref<10x5xf32, #tpu.memory_space<smem>>
    %60 = vector.broadcast %59 : f32 to vector<16x128xf32>
    %61 = arith.mulf %60, %58 : vector<16x128xf32>
    %62 = arith.addf %39, %61 : vector<16x128xf32>
    %c2_36 = arith.constant 2 : index
    %c1_37 = arith.constant 1 : index
    %63 = memref.load %arg1[%c2_36, %c1_37] : memref<10x5xf32, #tpu.memory_space<smem>>
    %64 = vector.broadcast %63 : f32 to vector<16x128xf32>
    %65 = arith.mulf %64, %58 : vector<16x128xf32>
    %66 = arith.addf %43, %65 : vector<16x128xf32>
    %c2_38 = arith.constant 2 : index
    %c2_39 = arith.constant 2 : index
    %67 = memref.load %arg1[%c2_38, %c2_39] : memref<10x5xf32, #tpu.memory_space<smem>>
    %68 = vector.broadcast %67 : f32 to vector<16x128xf32>
    %69 = arith.mulf %68, %58 : vector<16x128xf32>
    %70 = arith.addf %47, %69 : vector<16x128xf32>
    %c2_40 = arith.constant 2 : index
    %c3_41 = arith.constant 3 : index
    %71 = memref.load %arg1[%c2_40, %c3_41] : memref<10x5xf32, #tpu.memory_space<smem>>
    %72 = vector.broadcast %71 : f32 to vector<16x128xf32>
    %73 = arith.mulf %72, %58 : vector<16x128xf32>
    %74 = arith.addf %51, %73 : vector<16x128xf32>
    %c2_42 = arith.constant 2 : index
    %c4_43 = arith.constant 4 : index
    %75 = memref.load %arg1[%c2_42, %c4_43] : memref<10x5xf32, #tpu.memory_space<smem>>
    %76 = vector.broadcast %75 : f32 to vector<16x128xf32>
    %77 = arith.mulf %76, %58 : vector<16x128xf32>
    %78 = arith.addf %55, %77 : vector<16x128xf32>
    %c3_44 = arith.constant 3 : index
    %c0_45 = arith.constant 0 : index
    %c0_46 = arith.constant 0 : index
    %79 = vector.load %arg5[%c3_44, %c0_45, %c0_46] : memref<10x16x128xbf16, #tpu.memory_space<vmem>>, vector<1x16x128xbf16>
    %80 = vector.shape_cast %79 : vector<1x16x128xbf16> to vector<16x128xbf16>
    %81 = arith.extf %80 : vector<16x128xbf16> to vector<16x128xf32>
    %c3_47 = arith.constant 3 : index
    %c0_48 = arith.constant 0 : index
    %82 = memref.load %arg1[%c3_47, %c0_48] : memref<10x5xf32, #tpu.memory_space<smem>>
    %83 = vector.broadcast %82 : f32 to vector<16x128xf32>
    %84 = arith.mulf %83, %81 : vector<16x128xf32>
    %85 = arith.addf %62, %84 : vector<16x128xf32>
    %c3_49 = arith.constant 3 : index
    %c1_50 = arith.constant 1 : index
    %86 = memref.load %arg1[%c3_49, %c1_50] : memref<10x5xf32, #tpu.memory_space<smem>>
    %87 = vector.broadcast %86 : f32 to vector<16x128xf32>
    %88 = arith.mulf %87, %81 : vector<16x128xf32>
    %89 = arith.addf %66, %88 : vector<16x128xf32>
    %c3_51 = arith.constant 3 : index
    %c2_52 = arith.constant 2 : index
    %90 = memref.load %arg1[%c3_51, %c2_52] : memref<10x5xf32, #tpu.memory_space<smem>>
    %91 = vector.broadcast %90 : f32 to vector<16x128xf32>
    %92 = arith.mulf %91, %81 : vector<16x128xf32>
    %93 = arith.addf %70, %92 : vector<16x128xf32>
    %c3_53 = arith.constant 3 : index
    %c3_54 = arith.constant 3 : index
    %94 = memref.load %arg1[%c3_53, %c3_54] : memref<10x5xf32, #tpu.memory_space<smem>>
    %95 = vector.broadcast %94 : f32 to vector<16x128xf32>
    %96 = arith.mulf %95, %81 : vector<16x128xf32>
    %97 = arith.addf %74, %96 : vector<16x128xf32>
    %c3_55 = arith.constant 3 : index
    %c4_56 = arith.constant 4 : index
    %98 = memref.load %arg1[%c3_55, %c4_56] : memref<10x5xf32, #tpu.memory_space<smem>>
    %99 = vector.broadcast %98 : f32 to vector<16x128xf32>
    %100 = arith.mulf %99, %81 : vector<16x128xf32>
    %101 = arith.addf %78, %100 : vector<16x128xf32>
    %c4_57 = arith.constant 4 : index
    %c0_58 = arith.constant 0 : index
    %c0_59 = arith.constant 0 : index
    %102 = vector.load %arg5[%c4_57, %c0_58, %c0_59] : memref<10x16x128xbf16, #tpu.memory_space<vmem>>, vector<1x16x128xbf16>
    %103 = vector.shape_cast %102 : vector<1x16x128xbf16> to vector<16x128xbf16>
    %104 = arith.extf %103 : vector<16x128xbf16> to vector<16x128xf32>
    %c4_60 = arith.constant 4 : index
    %c0_61 = arith.constant 0 : index
    %105 = memref.load %arg1[%c4_60, %c0_61] : memref<10x5xf32, #tpu.memory_space<smem>>
    %106 = vector.broadcast %105 : f32 to vector<16x128xf32>
    %107 = arith.mulf %106, %104 : vector<16x128xf32>
    %108 = arith.addf %85, %107 : vector<16x128xf32>
    %c4_62 = arith.constant 4 : index
    %c1_63 = arith.constant 1 : index
    %109 = memref.load %arg1[%c4_62, %c1_63] : memref<10x5xf32, #tpu.memory_space<smem>>
    %110 = vector.broadcast %109 : f32 to vector<16x128xf32>
    %111 = arith.mulf %110, %104 : vector<16x128xf32>
    %112 = arith.addf %89, %111 : vector<16x128xf32>
    %c4_64 = arith.constant 4 : index
    %c2_65 = arith.constant 2 : index
    %113 = memref.load %arg1[%c4_64, %c2_65] : memref<10x5xf32, #tpu.memory_space<smem>>
    %114 = vector.broadcast %113 : f32 to vector<16x128xf32>
    %115 = arith.mulf %114, %104 : vector<16x128xf32>
    %116 = arith.addf %93, %115 : vector<16x128xf32>
    %c4_66 = arith.constant 4 : index
    %c3_67 = arith.constant 3 : index
    %117 = memref.load %arg1[%c4_66, %c3_67] : memref<10x5xf32, #tpu.memory_space<smem>>
    %118 = vector.broadcast %117 : f32 to vector<16x128xf32>
    %119 = arith.mulf %118, %104 : vector<16x128xf32>
    %120 = arith.addf %97, %119 : vector<16x128xf32>
    %c4_68 = arith.constant 4 : index
    %c4_69 = arith.constant 4 : index
    %121 = memref.load %arg1[%c4_68, %c4_69] : memref<10x5xf32, #tpu.memory_space<smem>>
    %122 = vector.broadcast %121 : f32 to vector<16x128xf32>
    %123 = arith.mulf %122, %104 : vector<16x128xf32>
    %124 = arith.addf %101, %123 : vector<16x128xf32>
    %c5 = arith.constant 5 : index
    %c0_70 = arith.constant 0 : index
    %c0_71 = arith.constant 0 : index
    %125 = vector.load %arg5[%c5, %c0_70, %c0_71] : memref<10x16x128xbf16, #tpu.memory_space<vmem>>, vector<1x16x128xbf16>
    %126 = vector.shape_cast %125 : vector<1x16x128xbf16> to vector<16x128xbf16>
    %127 = arith.extf %126 : vector<16x128xbf16> to vector<16x128xf32>
    %c5_72 = arith.constant 5 : index
    %c0_73 = arith.constant 0 : index
    %128 = memref.load %arg1[%c5_72, %c0_73] : memref<10x5xf32, #tpu.memory_space<smem>>
    %129 = vector.broadcast %128 : f32 to vector<16x128xf32>
    %130 = arith.mulf %129, %127 : vector<16x128xf32>
    %131 = arith.addf %108, %130 : vector<16x128xf32>
    %c5_74 = arith.constant 5 : index
    %c1_75 = arith.constant 1 : index
    %132 = memref.load %arg1[%c5_74, %c1_75] : memref<10x5xf32, #tpu.memory_space<smem>>
    %133 = vector.broadcast %132 : f32 to vector<16x128xf32>
    %134 = arith.mulf %133, %127 : vector<16x128xf32>
    %135 = arith.addf %112, %134 : vector<16x128xf32>
    %c5_76 = arith.constant 5 : index
    %c2_77 = arith.constant 2 : index
    %136 = memref.load %arg1[%c5_76, %c2_77] : memref<10x5xf32, #tpu.memory_space<smem>>
    %137 = vector.broadcast %136 : f32 to vector<16x128xf32>
    %138 = arith.mulf %137, %127 : vector<16x128xf32>
    %139 = arith.addf %116, %138 : vector<16x128xf32>
    %c5_78 = arith.constant 5 : index
    %c3_79 = arith.constant 3 : index
    %140 = memref.load %arg1[%c5_78, %c3_79] : memref<10x5xf32, #tpu.memory_space<smem>>
    %141 = vector.broadcast %140 : f32 to vector<16x128xf32>
    %142 = arith.mulf %141, %127 : vector<16x128xf32>
    %143 = arith.addf %120, %142 : vector<16x128xf32>
    %c5_80 = arith.constant 5 : index
    %c4_81 = arith.constant 4 : index
    %144 = memref.load %arg1[%c5_80, %c4_81] : memref<10x5xf32, #tpu.memory_space<smem>>
    %145 = vector.broadcast %144 : f32 to vector<16x128xf32>
    %146 = arith.mulf %145, %127 : vector<16x128xf32>
    %147 = arith.addf %124, %146 : vector<16x128xf32>
    %c6 = arith.constant 6 : index
    %c0_82 = arith.constant 0 : index
    %c0_83 = arith.constant 0 : index
    %148 = vector.load %arg5[%c6, %c0_82, %c0_83] : memref<10x16x128xbf16, #tpu.memory_space<vmem>>, vector<1x16x128xbf16>
    %149 = vector.shape_cast %148 : vector<1x16x128xbf16> to vector<16x128xbf16>
    %150 = arith.extf %149 : vector<16x128xbf16> to vector<16x128xf32>
    %c6_84 = arith.constant 6 : index
    %c0_85 = arith.constant 0 : index
    %151 = memref.load %arg1[%c6_84, %c0_85] : memref<10x5xf32, #tpu.memory_space<smem>>
    %152 = vector.broadcast %151 : f32 to vector<16x128xf32>
    %153 = arith.mulf %152, %150 : vector<16x128xf32>
    %154 = arith.addf %131, %153 : vector<16x128xf32>
    %c6_86 = arith.constant 6 : index
    %c1_87 = arith.constant 1 : index
    %155 = memref.load %arg1[%c6_86, %c1_87] : memref<10x5xf32, #tpu.memory_space<smem>>
    %156 = vector.broadcast %155 : f32 to vector<16x128xf32>
    %157 = arith.mulf %156, %150 : vector<16x128xf32>
    %158 = arith.addf %135, %157 : vector<16x128xf32>
    %c6_88 = arith.constant 6 : index
    %c2_89 = arith.constant 2 : index
    %159 = memref.load %arg1[%c6_88, %c2_89] : memref<10x5xf32, #tpu.memory_space<smem>>
    %160 = vector.broadcast %159 : f32 to vector<16x128xf32>
    %161 = arith.mulf %160, %150 : vector<16x128xf32>
    %162 = arith.addf %139, %161 : vector<16x128xf32>
    %c6_90 = arith.constant 6 : index
    %c3_91 = arith.constant 3 : index
    %163 = memref.load %arg1[%c6_90, %c3_91] : memref<10x5xf32, #tpu.memory_space<smem>>
    %164 = vector.broadcast %163 : f32 to vector<16x128xf32>
    %165 = arith.mulf %164, %150 : vector<16x128xf32>
    %166 = arith.addf %143, %165 : vector<16x128xf32>
    %c6_92 = arith.constant 6 : index
    %c4_93 = arith.constant 4 : index
    %167 = memref.load %arg1[%c6_92, %c4_93] : memref<10x5xf32, #tpu.memory_space<smem>>
    %168 = vector.broadcast %167 : f32 to vector<16x128xf32>
    %169 = arith.mulf %168, %150 : vector<16x128xf32>
    %170 = arith.addf %147, %169 : vector<16x128xf32>
    %c7 = arith.constant 7 : index
    %c0_94 = arith.constant 0 : index
    %c0_95 = arith.constant 0 : index
    %171 = vector.load %arg5[%c7, %c0_94, %c0_95] : memref<10x16x128xbf16, #tpu.memory_space<vmem>>, vector<1x16x128xbf16>
    %172 = vector.shape_cast %171 : vector<1x16x128xbf16> to vector<16x128xbf16>
    %173 = arith.extf %172 : vector<16x128xbf16> to vector<16x128xf32>
    %c7_96 = arith.constant 7 : index
    %c0_97 = arith.constant 0 : index
    %174 = memref.load %arg1[%c7_96, %c0_97] : memref<10x5xf32, #tpu.memory_space<smem>>
    %175 = vector.broadcast %174 : f32 to vector<16x128xf32>
    %176 = arith.mulf %175, %173 : vector<16x128xf32>
    %177 = arith.addf %154, %176 : vector<16x128xf32>
    %c7_98 = arith.constant 7 : index
    %c1_99 = arith.constant 1 : index
    %178 = memref.load %arg1[%c7_98, %c1_99] : memref<10x5xf32, #tpu.memory_space<smem>>
    %179 = vector.broadcast %178 : f32 to vector<16x128xf32>
    %180 = arith.mulf %179, %173 : vector<16x128xf32>
    %181 = arith.addf %158, %180 : vector<16x128xf32>
    %c7_100 = arith.constant 7 : index
    %c2_101 = arith.constant 2 : index
    %182 = memref.load %arg1[%c7_100, %c2_101] : memref<10x5xf32, #tpu.memory_space<smem>>
    %183 = vector.broadcast %182 : f32 to vector<16x128xf32>
    %184 = arith.mulf %183, %173 : vector<16x128xf32>
    %185 = arith.addf %162, %184 : vector<16x128xf32>
    %c7_102 = arith.constant 7 : index
    %c3_103 = arith.constant 3 : index
    %186 = memref.load %arg1[%c7_102, %c3_103] : memref<10x5xf32, #tpu.memory_space<smem>>
    %187 = vector.broadcast %186 : f32 to vector<16x128xf32>
    %188 = arith.mulf %187, %173 : vector<16x128xf32>
    %189 = arith.addf %166, %188 : vector<16x128xf32>
    %c7_104 = arith.constant 7 : index
    %c4_105 = arith.constant 4 : index
    %190 = memref.load %arg1[%c7_104, %c4_105] : memref<10x5xf32, #tpu.memory_space<smem>>
    %191 = vector.broadcast %190 : f32 to vector<16x128xf32>
    %192 = arith.mulf %191, %173 : vector<16x128xf32>
    %193 = arith.addf %170, %192 : vector<16x128xf32>
    %c8 = arith.constant 8 : index
    %c0_106 = arith.constant 0 : index
    %c0_107 = arith.constant 0 : index
    %194 = vector.load %arg5[%c8, %c0_106, %c0_107] : memref<10x16x128xbf16, #tpu.memory_space<vmem>>, vector<1x16x128xbf16>
    %195 = vector.shape_cast %194 : vector<1x16x128xbf16> to vector<16x128xbf16>
    %196 = arith.extf %195 : vector<16x128xbf16> to vector<16x128xf32>
    %c8_108 = arith.constant 8 : index
    %c0_109 = arith.constant 0 : index
    %197 = memref.load %arg1[%c8_108, %c0_109] : memref<10x5xf32, #tpu.memory_space<smem>>
    %198 = vector.broadcast %197 : f32 to vector<16x128xf32>
    %199 = arith.mulf %198, %196 : vector<16x128xf32>
    %200 = arith.addf %177, %199 : vector<16x128xf32>
    %c8_110 = arith.constant 8 : index
    %c1_111 = arith.constant 1 : index
    %201 = memref.load %arg1[%c8_110, %c1_111] : memref<10x5xf32, #tpu.memory_space<smem>>
    %202 = vector.broadcast %201 : f32 to vector<16x128xf32>
    %203 = arith.mulf %202, %196 : vector<16x128xf32>
    %204 = arith.addf %181, %203 : vector<16x128xf32>
    %c8_112 = arith.constant 8 : index
    %c2_113 = arith.constant 2 : index
    %205 = memref.load %arg1[%c8_112, %c2_113] : memref<10x5xf32, #tpu.memory_space<smem>>
    %206 = vector.broadcast %205 : f32 to vector<16x128xf32>
    %207 = arith.mulf %206, %196 : vector<16x128xf32>
    %208 = arith.addf %185, %207 : vector<16x128xf32>
    %c8_114 = arith.constant 8 : index
    %c3_115 = arith.constant 3 : index
    %209 = memref.load %arg1[%c8_114, %c3_115] : memref<10x5xf32, #tpu.memory_space<smem>>
    %210 = vector.broadcast %209 : f32 to vector<16x128xf32>
    %211 = arith.mulf %210, %196 : vector<16x128xf32>
    %212 = arith.addf %189, %211 : vector<16x128xf32>
    %c8_116 = arith.constant 8 : index
    %c4_117 = arith.constant 4 : index
    %213 = memref.load %arg1[%c8_116, %c4_117] : memref<10x5xf32, #tpu.memory_space<smem>>
    %214 = vector.broadcast %213 : f32 to vector<16x128xf32>
    %215 = arith.mulf %214, %196 : vector<16x128xf32>
    %216 = arith.addf %193, %215 : vector<16x128xf32>
    %c9 = arith.constant 9 : index
    %c0_118 = arith.constant 0 : index
    %c0_119 = arith.constant 0 : index
    %217 = vector.load %arg5[%c9, %c0_118, %c0_119] : memref<10x16x128xbf16, #tpu.memory_space<vmem>>, vector<1x16x128xbf16>
    %218 = vector.shape_cast %217 : vector<1x16x128xbf16> to vector<16x128xbf16>
    %219 = arith.extf %218 : vector<16x128xbf16> to vector<16x128xf32>
    %c9_120 = arith.constant 9 : index
    %c0_121 = arith.constant 0 : index
    %220 = memref.load %arg1[%c9_120, %c0_121] : memref<10x5xf32, #tpu.memory_space<smem>>
    %221 = vector.broadcast %220 : f32 to vector<16x128xf32>
    %222 = arith.mulf %221, %219 : vector<16x128xf32>
    %223 = arith.addf %200, %222 : vector<16x128xf32>
    %c9_122 = arith.constant 9 : index
    %c1_123 = arith.constant 1 : index
    %224 = memref.load %arg1[%c9_122, %c1_123] : memref<10x5xf32, #tpu.memory_space<smem>>
    %225 = vector.broadcast %224 : f32 to vector<16x128xf32>
    %226 = arith.mulf %225, %219 : vector<16x128xf32>
    %227 = arith.addf %204, %226 : vector<16x128xf32>
    %c9_124 = arith.constant 9 : index
    %c2_125 = arith.constant 2 : index
    %228 = memref.load %arg1[%c9_124, %c2_125] : memref<10x5xf32, #tpu.memory_space<smem>>
    %229 = vector.broadcast %228 : f32 to vector<16x128xf32>
    %230 = arith.mulf %229, %219 : vector<16x128xf32>
    %231 = arith.addf %208, %230 : vector<16x128xf32>
    %c9_126 = arith.constant 9 : index
    %c3_127 = arith.constant 3 : index
    %232 = memref.load %arg1[%c9_126, %c3_127] : memref<10x5xf32, #tpu.memory_space<smem>>
    %233 = vector.broadcast %232 : f32 to vector<16x128xf32>
    %234 = arith.mulf %233, %219 : vector<16x128xf32>
    %235 = arith.addf %212, %234 : vector<16x128xf32>
    %c9_128 = arith.constant 9 : index
    %c4_129 = arith.constant 4 : index
    %236 = memref.load %arg1[%c9_128, %c4_129] : memref<10x5xf32, #tpu.memory_space<smem>>
    %237 = vector.broadcast %236 : f32 to vector<16x128xf32>
    %238 = arith.mulf %237, %219 : vector<16x128xf32>
    %239 = arith.addf %216, %238 : vector<16x128xf32>
    %cst = arith.constant 0.000000e+00 : f32
    %240 = vector.broadcast %cst : f32 to vector<16x128xf32>
    %241 = arith.maximumf %223, %240 : vector<16x128xf32>
    %cst_130 = arith.constant 0.000000e+00 : f32
    %242 = vector.broadcast %cst_130 : f32 to vector<16x128xf32>
    %243 = arith.maximumf %227, %242 : vector<16x128xf32>
    %cst_131 = arith.constant 0.000000e+00 : f32
    %244 = vector.broadcast %cst_131 : f32 to vector<16x128xf32>
    %245 = arith.maximumf %231, %244 : vector<16x128xf32>
    %cst_132 = arith.constant 0.000000e+00 : f32
    %246 = vector.broadcast %cst_132 : f32 to vector<16x128xf32>
    %247 = arith.maximumf %235, %246 : vector<16x128xf32>
    %cst_133 = arith.constant 0.000000e+00 : f32
    %248 = vector.broadcast %cst_133 : f32 to vector<16x128xf32>
    %249 = arith.maximumf %239, %248 : vector<16x128xf32>
    %c0_134 = arith.constant 0 : index
    %c0_135 = arith.constant 0 : index
    %250 = memref.load %arg3[%c0_134, %c0_135] : memref<5x1xf32, #tpu.memory_space<smem>>
    %251 = vector.broadcast %250 : f32 to vector<16x128xf32>
    %252 = arith.mulf %251, %241 : vector<16x128xf32>
    %c0_136 = arith.constant 0 : index
    %c0_137 = arith.constant 0 : index
    %253 = memref.load %arg4[%c0_136, %c0_137] : memref<1x1xf32, #tpu.memory_space<smem>>
    %254 = vector.broadcast %253 : f32 to vector<16x128xf32>
    %255 = arith.addf %252, %254 : vector<16x128xf32>
    %c1_138 = arith.constant 1 : index
    %c0_139 = arith.constant 0 : index
    %256 = memref.load %arg3[%c1_138, %c0_139] : memref<5x1xf32, #tpu.memory_space<smem>>
    %257 = vector.broadcast %256 : f32 to vector<16x128xf32>
    %258 = arith.mulf %257, %243 : vector<16x128xf32>
    %259 = arith.addf %255, %258 : vector<16x128xf32>
    %c2_140 = arith.constant 2 : index
    %c0_141 = arith.constant 0 : index
    %260 = memref.load %arg3[%c2_140, %c0_141] : memref<5x1xf32, #tpu.memory_space<smem>>
    %261 = vector.broadcast %260 : f32 to vector<16x128xf32>
    %262 = arith.mulf %261, %245 : vector<16x128xf32>
    %263 = arith.addf %259, %262 : vector<16x128xf32>
    %c3_142 = arith.constant 3 : index
    %c0_143 = arith.constant 0 : index
    %264 = memref.load %arg3[%c3_142, %c0_143] : memref<5x1xf32, #tpu.memory_space<smem>>
    %265 = vector.broadcast %264 : f32 to vector<16x128xf32>
    %266 = arith.mulf %265, %247 : vector<16x128xf32>
    %267 = arith.addf %263, %266 : vector<16x128xf32>
    %c4_144 = arith.constant 4 : index
    %c0_145 = arith.constant 0 : index
    %268 = memref.load %arg3[%c4_144, %c0_145] : memref<5x1xf32, #tpu.memory_space<smem>>
    %269 = vector.broadcast %268 : f32 to vector<16x128xf32>
    %270 = arith.mulf %269, %249 : vector<16x128xf32>
    %271 = arith.addf %267, %270 : vector<16x128xf32>
    %c0_146 = arith.constant 0 : index
    %c0_147 = arith.constant 0 : index
    %c0_148 = arith.constant 0 : index
    %272 = vector.load %arg6[%c0_146, %c0_147, %c0_148] : memref<1x16x128xf32, #tpu.memory_space<vmem>>, vector<1x16x128xf32>
    %273 = vector.shape_cast %272 : vector<1x16x128xf32> to vector<16x128xf32>
    %274 = vector.shape_cast %271 : vector<16x128xf32> to vector<1x16x128xf32>
    tpu.vector_store %arg6[%c0_146, %c0_147, %c0_148], %274 {strides = array<i32>} : memref<1x16x128xf32, #tpu.memory_space<vmem>>, vector<1x16x128xf32>,
    return
  }
  func.func @transform_0(%arg0: i32) -> (i32, i32) {
    %c0_i32 = arith.constant 0 : i32
    %c0_i32_0 = arith.constant 0 : i32
    %c0_i32_1 = arith.constant 0 : i32
    return %c0_i32, %c0_i32_0 : i32, i32
  }
  func.func @transform_1(%arg0: i32) -> (i32, i32) {
    %c0_i32 = arith.constant 0 : i32
    %c0_i32_0 = arith.constant 0 : i32
    %c0_i32_1 = arith.constant 0 : i32
    return %c0_i32, %c0_i32_0 : i32, i32
  }
  func.func @transform_2(%arg0: i32) -> (i32, i32) {
    %c0_i32 = arith.constant 0 : i32
    %c0_i32_0 = arith.constant 0 : i32
    %c0_i32_1 = arith.constant 0 : i32
    return %c0_i32, %c0_i32_0 : i32, i32
  }
  func.func @transform_3(%arg0: i32) -> (i32, i32) {
    %c0_i32 = arith.constant 0 : i32
    %c0_i32_0 = arith.constant 0 : i32
    %c0_i32_1 = arith.constant 0 : i32
    return %c0_i32, %c0_i32_0 : i32, i32
  }
  func.func @transform_4(%arg0: i32) -> (i32, i32, i32) {
    %c0_i32 = arith.constant 0 : i32
    %c0_i32_0 = arith.constant 0 : i32
    %c0_i32_1 = arith.constant 0 : i32
    return %c0_i32, %arg0, %c0_i32_0 : i32, i32, i32
  }
  func.func @transform_5(%arg0: i32) -> (i32, i32, i32) {
    %c0_i32 = arith.constant 0 : i32
    %c0_i32_0 = arith.constant 0 : i32
    %c0_i32_1 = arith.constant 0 : i32
    return %c0_i32, %arg0, %c0_i32_0 : i32, i32, i32
  }
}

</mosaic_0001>

<bundles_post_ra>
// kernel: tpu_custom_call.1
= control target key start
LH: loop header
LB: loop body
LE: loop exit
PB: predicated region body
PF: predicated region fallthrough
CT: control target
= control target key end

     0   :  { %11 = vsyncpa [#allocation6], 0  ;;  %s1099_s0 = inlined_call_operand.vmem [shape: f32[10,5], index: 0, kind: input, shape index: {}]   ;;  %s1100_s1 = inlined_call_operand.vmem [shape: f32[1,5], index: 1, kind: input, shape index: {}]   ;;  %s1101_s2 = inlined_call_operand.vmem [shape: f32[5,1], index: 2, kind: input, shape index: {}]   ;;  %s1102_s3 = inlined_call_operand.<no memory space> [shape: f32[1,1], index: 3, kind: input, shape index: {}]   ;;  %s1103_s4 = inlined_call_operand.hbm [shape: bf16[10,16,128], index: 4, kind: input, shape index: {}]   ;;  %s1104_s5 = inlined_call_operand.hbm [shape: f32[1,16,128], index: 5, kind: output, shape index: {}]  }
   0x1   :  { %12 = vsyncpa [#allocation8], 0 }
   0x2   :  { %13 = vsyncpa [#allocation4], 0  ;;  %s33_s20 = sshll.u32 %s1100_s1, 4  ;;  %s34_s20 = int_to_ptr.vmem [resolvable:$true] %s33_s20 }
   0x3   :  { %14 = vsyncpa [#allocation5], 0  ;;  %s20_s23 = sshll.u32 %s1099_s0, 4  ;;  %s602_s24 = scalar_lea.vmem %s34_s20, 16  ;;  %s21_s23 = int_to_ptr.vmem [resolvable:$true] %s20_s23 }
   0x4   :  { %p603_p0 = scmp.ne.s32.totalorder %s34_s20, %s602_s24  ;;  %p607_p1 = scmp.lt.s32.totalorder %s34_s20, %s34_s20 }
   0x5   :  { %p608_p2 = scmp.lt.s32.totalorder %s602_s24, %s602_s24 }
   0x7   :  { %p609_p3 = por %p608_p2, %p607_p1 }
   0x9   :  { %p610_p4 = pnand %p609_p3, %p603_p0 }
   0xb   :  { %613 = shalt.err (!%p610_p4)
}
   0xc   :  { %s690_s25 = smov [#allocation7]   ;;  %s614_s26 = scalar_lea.vmem %s21_s23, 256 }
   0xd   :  { %36 = dma.vmem_to_smem %s34_s20, 16, %s690_s25, [#allocation8]  }
   0xe   :  { %p615_p5 = scmp.ne.s32.totalorder %s21_s23, %s614_s26  ;;  %p619_p6 = scmp.lt.s32.totalorder %s21_s23, %s21_s23 }
   0xf   :  { %p620_p7 = scmp.lt.s32.totalorder %s614_s26, %s614_s26 }
  0x11   :  { %p621_p8 = por %p620_p7, %p619_p6 }
  0x13   :  { %p622_p9 = pnand %p621_p8, %p615_p5 }
  0x15   :  { %625 = shalt.err (!%p622_p9)
}
  0x16   :  { %s691_s1 = smov [#allocation3]   ;;  %s692_s27 = smov 128  }
  0x17   :  { %s693_s0 = smov 8   ;;  %s43_s30 = sshll.u32 %s1101_s2, 4  ;;  %s44_s30 = int_to_ptr.vmem [resolvable:$true] %s43_s30 }
  0x18   :  { %26 = dma.vmem_to_smem %s21_s23, 256, %s691_s1, [#allocation6], %s692_s27, %s692_s27, %s693_s0  }
  0x19   :  { %s626_s6 = scalar_lea.vmem %s44_s30, 128  ;;  %p631_p11 = scmp.lt.s32.totalorder %s44_s30, %s44_s30 }
  0x1a   :  { %p627_p10 = scmp.ne.s32.totalorder %s44_s30, %s626_s6  ;;  %p632_p12 = scmp.lt.s32.totalorder %s626_s6, %s626_s6 }
  0x1c   :  { %p633_p13 = por %p632_p12, %p631_p11 }
  0x1e   :  { %p634_p0 = pnand %p633_p13, %p627_p10 }
  0x20   :  { %637 = shalt.err (!%p634_p0)
}
  0x21   :  { %s694_s7 = smov [#allocation9]   ;;  %s695_s8 = smov [#allocation10]  }
  0x22   :  { %46 = dma.vmem_to_smem %s44_s30, 128, %s694_s7, [#allocation8]  }
  0x23   :  { %s54_s9 = sshll.u32 %s695_s8, 4  ;;  %s638_s12 = scalar_lea.hbm %s1103_s4, 1280  ;;  %s55_s9 = int_to_ptr.vmem [resolvable:$true] %s54_s9 }
  0x24   :  { %p639_p1 = scmp.ne.s32.totalorder %s1103_s4, %s638_s12  ;;  %p642_p2 = scmp.lt.u32.totalorder %s638_s12, %s1103_s4 }
  0x26   :  { %p644_p3 = pnand %p642_p2, %p639_p1 }
  0x28   :  { %647 = shalt.err (!%p644_p3)
}
  0x29   :  { %s648_s16 = scalar_lea.vmem %s55_s9, 1280  ;;  %p653_p5 = scmp.lt.s32.totalorder %s55_s9, %s55_s9 }
  0x2a   :  { %p649_p4 = scmp.ne.s32.totalorder %s55_s9, %s648_s16  ;;  %p654_p6 = scmp.lt.s32.totalorder %s648_s16, %s648_s16 }
  0x2c   :  { %p655_p7 = por %p654_p6, %p653_p5 }
  0x2e   :  { %p656_p8 = pnand %p655_p7, %p649_p4 }
  0x30   :  { %659 = shalt.err (!%p656_p8)
}
  0x31   :  { %s696_s17 = smov 64   ;;  %s697_s18 = smov 4  }
  0x32   :  { %60 = dma.hbm_to_vmem [thread:$0]  %s1103_s4, 1280, %s55_s9, [#allocation4], %s696_s17, %s696_s17, %s697_s18  }
  0x33   :  { %682 = dma.done.wait [#allocation6], 256  }
  0x34   :  { %683 = vsyncadd [#allocation6], 4294967040 }
  0x35   :  { %684 = dma.done.wait [#allocation8], 144  }
  0x36   :  { %685 = vsyncadd [#allocation8], 4294967152 }
  0x37   :  { %686 = dma.done.wait [#allocation4], 1280  }
  0x38   :  { %687 = vsyncadd [#allocation4], 4294966016 }
  0x39   :  { %73 = sfence }
  0x3a   :  { %v554_v0 = vld [vmem:[#allocation10] sm:$0xff]   ;;  %s753_s21 = sld [smem:[#allocation3]]  ;;  %v558_v1 = vld [vmem:[#allocation10 + $0x8] sm:$0xff]   ;;  %s759_s23 = sld [smem:[#allocation3 + $0x1]]  ;;  %v562_v3 = vld [vmem:[#allocation10 + $0x10] sm:$0xff]   ;;  %v448_v5 = vstv %s1102_s3 }
  0x3b   :  { %s755_s22 = sld [smem:[#allocation7]]  ;;  %v757_v2 = vunpack.c.l.bf16 %v554_v0  ;;  %s761_s24 = sld [smem:[#allocation7 + $0x1]]  ;;  %v566_v4 = vld [vmem:[#allocation10 + $0x18] sm:$0xff]   ;;  %v766_v6 = vunpack.c.h.bf16 %v554_v0  ;;  %v772_v7 = vunpack.c.l.bf16 %v558_v1  ;;  %v774_v8 = vunpack.c.h.bf16 %v558_v1  ;;  %v570_v10 = vld [vmem:[#allocation10 + $0x20] sm:$0xff]   ;;  %v574_v11 = vld [vmem:[#allocation10 + $0x28] sm:$0xff]  }
  0x3c   :  { %s768_s26 = sld [smem:[#allocation3 + $0x2]]  ;;  %v776_v9 = vunpack.c.l.bf16 %v562_v3  ;;  %s778_s28 = sld [smem:[#allocation3 + $0x3]]  ;;  %v782_v12 = vunpack.c.h.bf16 %v562_v3  ;;  %v784_v13 = vunpack.c.l.bf16 %v566_v4  ;;  %v786_v14 = vunpack.c.h.bf16 %v566_v4  ;;  %v578_v16 = vld [vmem:[#allocation10 + $0x30] sm:$0xff]   ;;  %v582_v17 = vld [vmem:[#allocation10 + $0x38] sm:$0xff]   ;;  %v586_v22 = vld [vmem:[#allocation10 + $0x40] sm:$0xff]  }
  0x3d   :  { %s770_s1 = sld [smem:[#allocation7 + $0x2]]  ;;  %s780_s29 = sld [smem:[#allocation7 + $0x3]]  ;;  %v788_v15 = vunpack.c.l.bf16 %v570_v10  ;;  %v794_v18 = vunpack.c.h.bf16 %v570_v10  ;;  %v796_v19 = vunpack.c.l.bf16 %v574_v11  ;;  %v798_v20 = vunpack.c.h.bf16 %v574_v11  ;;  %v590_v23 = vld [vmem:[#allocation10 + $0x48] sm:$0xff]  }
  0x3e   :  { %s790_s30 = sld [smem:[#allocation3 + $0x4]]  ;;  %v800_v21 = vunpack.c.l.bf16 %v578_v16  ;;  %s802_s7 = sld [smem:[#allocation3 + $0x80]]  ;;  %v806_v24 = vunpack.c.h.bf16 %v578_v16  ;;  %v808_v25 = vunpack.c.l.bf16 %v582_v17  ;;  %v810_v26 = vunpack.c.h.bf16 %v582_v17 }
  0x3f   :  { %s792_s6 = sld [smem:[#allocation7 + $0x4]]  ;;  %s804_s8 = sld [smem:[#allocation3 + $0x81]]  ;;  %v812_v27 = vunpack.c.l.bf16 %v586_v22  ;;  %v816_v30 = vunpack.c.h.bf16 %v586_v22  ;;  %v818_v31 = vunpack.c.l.bf16 %v590_v23  ;;  %v838_v43 = vunpack.c.h.bf16 %v590_v23 }
  0x40   :  { %v79_v28 = vstv %s753_s21  ;;  %v87_v34 = vstv %s759_s23  ;;  %s824_s9 = sld [smem:[#allocation3 + $0x82]]  ;;  %s826_s10 = sld [smem:[#allocation3 + $0x83]] }
  0x41   :  { %v83_v29 = vstv %s755_s22  ;;  %v80_v32 = vmul.f32 %v757_v2, %v79_v28  ;;  %v81_v33 = vmul.f32 %v766_v6, %v79_v28  ;;  %v91_v35 = vstv %s761_s24  ;;  %s834_s11 = sld [smem:[#allocation3 + $0x84]]  ;;  %s836_s12 = sld [smem:[#allocation3 + $0x100]] }
  0x42   :  { %v88_v36 = vmul.f32 %v757_v2, %v87_v34  ;;  %v89_v37 = vmul.f32 %v766_v6, %v87_v34  ;;  %v95_v38 = vstv %s768_s26  ;;  %v103_v46 = vstv %s778_s28  ;;  %s842_s13 = sld [smem:[#allocation3 + $0x101]]  ;;  %s844_s14 = sld [smem:[#allocation3 + $0x102]] }
  0x43   :  { %v99_v39 = vstv %s770_s1  ;;  %v84_v40 = vadd.f32 %v83_v29, %v80_v32  ;;  %v96_v41 = vmul.f32 %v757_v2, %v95_v38  ;;  %v97_v42 = vmul.f32 %v766_v6, %v95_v38  ;;  %s860_s2 = sld [smem:[#allocation3 + $0x103]]  ;;  %s862_s15 = sld [smem:[#allocation3 + $0x104]] }
  0x44   :  { %v85_v44 = vadd.f32 %v83_v29, %v81_v33  ;;  %v92_v45 = vadd.f32 %v91_v35, %v88_v36  ;;  %v107_v47 = vstv %s780_s29  ;;  %v93_v48 = vadd.f32 %v91_v35, %v89_v37  ;;  %s864_s16 = sld [smem:[#allocation3 + $0x180]]  ;;  %s866_s17 = sld [smem:[#allocation3 + $0x181]] }
  0x45   :  { %v100_v49 = vadd.f32 %v99_v39, %v96_v41  ;;  %v104_v50 = vmul.f32 %v757_v2, %v103_v46  ;;  %v105_v51 = vmul.f32 %v766_v6, %v103_v46  ;;  %v111_v52 = vstv %s790_s30  ;;  %s880_s18 = sld [smem:[#allocation3 + $0x182]]  ;;  %s882_s19 = sld [smem:[#allocation3 + $0x183]] }
  0x46   :  { %v115_v53 = vstv %s792_s6  ;;  %v124_v54 = vstv %s802_s7  ;;  %v130_v55 = vstv %s804_s8  ;;  %v101_v56 = vadd.f32 %v99_v39, %v97_v42  ;;  %s887_s20 = sld [smem:[#allocation3 + $0x184]]  ;;  %s889_s21 = sld [smem:[#allocation3 + $0x200]] }
  0x47   :  { %v108_v57 = vadd.f32 %v107_v47, %v104_v50  ;;  %v112_v58 = vmul.f32 %v757_v2, %v111_v52  ;;  %v113_v59 = vmul.f32 %v766_v6, %v111_v52  ;;  %v109_v60 = vadd.f32 %v107_v47, %v105_v51  ;;  %s900_s22 = sld [smem:[#allocation3 + $0x201]]  ;;  %s902_s23 = sld [smem:[#allocation3 + $0x202]] }
  0x48   :  { %v125_v61 = vmul.f32 %v772_v7, %v124_v54  ;;  %v126_v62 = vmul.f32 %v774_v8, %v124_v54  ;;  %v131_v63 = vmul.f32 %v772_v7, %v130_v55  ;;  %v132_v1 = vmul.f32 %v774_v8, %v130_v55  ;;  %s907_s24 = sld [smem:[#allocation3 + $0x203]]  ;;  %s909_s4 = sld [smem:[#allocation3 + $0x204]] }
  0x49   :  { %v116_v0 = vadd.f32 %v115_v53, %v112_v58  ;;  %v136_v3 = vstv %s824_s9  ;;  %v142_v4 = vstv %s826_s10  ;;  %v117_v2 = vadd.f32 %v115_v53, %v113_v59  ;;  %s920_s25 = sld [smem:[#allocation3 + $0x280]]  ;;  %s922_s26 = sld [smem:[#allocation3 + $0x281]] }
  0x4a   :  { %v127_v6 = vadd.f32 %v125_v61, %v84_v40  ;;  %v128_v10 = vadd.f32 %v126_v62, %v85_v44  ;;  %v133_v11 = vadd.f32 %v131_v63, %v92_v45  ;;  %v137_v16 = vmul.f32 %v772_v7, %v136_v3  ;;  %s927_s1 = sld [smem:[#allocation3 + $0x282]]  ;;  %s929_s28 = sld [smem:[#allocation3 + $0x283]] }
  0x4b   :  { %v138_v17 = vmul.f32 %v774_v8, %v136_v3  ;;  %v143_v22 = vmul.f32 %v772_v7, %v142_v4  ;;  %v144_v23 = vmul.f32 %v774_v8, %v142_v4  ;;  %v148_v28 = vstv %s834_s11  ;;  %s940_s29 = sld [smem:[#allocation3 + $0x284]]  ;;  %s942_s30 = sld [smem:[#allocation3 + $0x300]] }
  0x4c   :  { %v159_v29 = vstv %s836_s12  ;;  %v165_v32 = vstv %s842_s13  ;;  %v171_v33 = vstv %s844_s14  ;;  %v134_v34 = vadd.f32 %v132_v1, %v93_v48  ;;  %s947_s6 = sld [smem:[#allocation3 + $0x301]]  ;;  %s949_s7 = sld [smem:[#allocation3 + $0x302]] }
  0x4d   :  { %v139_v35 = vadd.f32 %v137_v16, %v100_v49  ;;  %v140_v36 = vadd.f32 %v138_v17, %v101_v56  ;;  %v145_v37 = vadd.f32 %v143_v22, %v108_v57  ;;  %v149_v38 = vmul.f32 %v772_v7, %v148_v28  ;;  %s960_s8 = sld [smem:[#allocation3 + $0x303]]  ;;  %s962_s9 = sld [smem:[#allocation3 + $0x304]] }
  0x4e   :  { %v150_v39 = vmul.f32 %v774_v8, %v148_v28  ;;  %v160_v40 = vmul.f32 %v776_v9, %v159_v29  ;;  %v161_v41 = vmul.f32 %v782_v12, %v159_v29  ;;  %v146_v42 = vadd.f32 %v144_v23, %v109_v60  ;;  %s967_s10 = sld [smem:[#allocation3 + $0x380]]  ;;  %s969_s11 = sld [smem:[#allocation3 + $0x381]] }
  0x4f   :  { %v166_v44 = vmul.f32 %v776_v9, %v165_v32  ;;  %v167_v45 = vmul.f32 %v782_v12, %v165_v32  ;;  %v172_v7 = vmul.f32 %v776_v9, %v171_v33  ;;  %v151_v8 = vadd.f32 %v149_v38, %v116_v0  ;;  %s980_s12 = sld [smem:[#allocation3 + $0x382]]  ;;  %s982_s13 = sld [smem:[#allocation3 + $0x383]] }
  0x50   :  { %v152_v46 = vadd.f32 %v150_v39, %v117_v2  ;;  %v162_v47 = vadd.f32 %v160_v40, %v127_v6  ;;  %v173_v48 = vmul.f32 %v782_v12, %v171_v33  ;;  %v163_v49 = vadd.f32 %v161_v41, %v128_v10  ;;  %s987_s14 = sld [smem:[#allocation3 + $0x384]] }
  0x51   :  { %v168_v50 = vadd.f32 %v166_v44, %v133_v11  ;;  %v169_v51 = vadd.f32 %v167_v45, %v134_v34  ;;  %v174_v52 = vadd.f32 %v172_v7, %v139_v35  ;;  %v177_v53 = vstv %s860_s2  ;;  %s989_s2 = sld [smem:[#allocation3 + $0x400]] }
  0x52   :  { %v183_v54 = vstv %s862_s15  ;;  %v194_v55 = vstv %s864_s16  ;;  %v200_v56 = vstv %s866_s17  ;;  %v178_v57 = vmul.f32 %v776_v9, %v177_v53  ;;  %s1000_s15 = sld [smem:[#allocation3 + $0x401]]  ;;  %s1002_s16 = sld [smem:[#allocation3 + $0x402]] }
  0x53   :  { %v179_v58 = vmul.f32 %v782_v12, %v177_v53  ;;  %v184_v59 = vmul.f32 %v776_v9, %v183_v54  ;;  %v185_v60 = vmul.f32 %v782_v12, %v183_v54  ;;  %v175_v61 = vadd.f32 %v173_v48, %v140_v36  ;;  %s1007_s17 = sld [smem:[#allocation3 + $0x403]] }
  0x54   :  { %v195_v62 = vmul.f32 %v784_v13, %v194_v55  ;;  %v196_v63 = vmul.f32 %v786_v14, %v194_v55  ;;  %v201_v0 = vmul.f32 %v784_v13, %v200_v56  ;;  %v180_v9 = vadd.f32 %v178_v57, %v145_v37 }
  0x55   :  { %v181_v12 = vadd.f32 %v179_v58, %v146_v42  ;;  %v186_v1 = vadd.f32 %v184_v59, %v151_v8  ;;  %v202_v3 = vmul.f32 %v786_v14, %v200_v56  ;;  %v187_v4 = vadd.f32 %v185_v60, %v152_v46 }
  0x56   :  { %v197_v2 = vadd.f32 %v195_v62, %v162_v47  ;;  %v198_v6 = vadd.f32 %v196_v63, %v163_v49  ;;  %v203_v10 = vadd.f32 %v201_v0, %v168_v50  ;;  %v206_v11 = vstv %s880_s18  ;;  %s1009_s18 = sld [smem:[#allocation3 + $0x404]] }
  0x57   :  { %v212_v16 = vstv %s882_s19  ;;  %v218_v17 = vstv %s887_s20  ;;  %v229_v22 = vstv %s889_s21  ;;  %v207_v23 = vmul.f32 %v784_v13, %v206_v11  ;;  %s1020_s19 = sld [smem:[#allocation3 + $0x480]]  ;;  %s1022_s20 = sld [smem:[#allocation3 + $0x481]] }
  0x58   :  { %v208_v28 = vmul.f32 %v786_v14, %v206_v11  ;;  %v213_v29 = vmul.f32 %v784_v13, %v212_v16  ;;  %v214_v32 = vmul.f32 %v786_v14, %v212_v16  ;;  %v204_v33 = vadd.f32 %v202_v3, %v169_v51  ;;  %s1027_s21 = sld [smem:[#allocation3 + $0x482]] }
  0x59   :  { %v219_v34 = vmul.f32 %v784_v13, %v218_v17  ;;  %v220_v35 = vmul.f32 %v786_v14, %v218_v17  ;;  %v230_v36 = vmul.f32 %v788_v15, %v229_v22  ;;  %v209_v37 = vadd.f32 %v207_v23, %v174_v52 }
  0x5a   :  { %v210_v38 = vadd.f32 %v208_v28, %v175_v61  ;;  %v215_v39 = vadd.f32 %v213_v29, %v180_v9  ;;  %v231_v40 = vmul.f32 %v794_v18, %v229_v22  ;;  %v216_v41 = vadd.f32 %v214_v32, %v181_v12 }
  0x5b   :  { %v221_v42 = vadd.f32 %v219_v34, %v186_v1  ;;  %v222_v44 = vadd.f32 %v220_v35, %v187_v4  ;;  %v232_v45 = vadd.f32 %v230_v36, %v197_v2  ;;  %v235_v7 = vstv %s900_s22  ;;  %s1029_s22 = sld [smem:[#allocation3 + $0x483]] }
  0x5c   :  { %v241_v13 = vstv %s902_s23  ;;  %v247_v8 = vstv %s907_s24  ;;  %v253_v46 = vstv %s909_s4  ;;  %v236_v14 = vmul.f32 %v788_v15, %v235_v7  ;;  %s1043_s23 = sld [smem:[#allocation3 + $0x484]]  ;;  %s1046_s24 = sld [smem:[#allocation9]] }
  0x5d   :  { %v237_v47 = vmul.f32 %v794_v18, %v235_v7  ;;  %v242_v48 = vmul.f32 %v788_v15, %v241_v13  ;;  %v243_v49 = vmul.f32 %v794_v18, %v241_v13  ;;  %v233_v50 = vadd.f32 %v231_v40, %v198_v6  ;;  %s1052_s4 = sld [smem:[#allocation9 + $0x80]] }
  0x5e   :  { %v248_v51 = vmul.f32 %v788_v15, %v247_v8  ;;  %v249_v52 = vmul.f32 %v794_v18, %v247_v8  ;;  %v254_v53 = vmul.f32 %v788_v15, %v253_v46  ;;  %v238_v54 = vadd.f32 %v236_v14, %v203_v10 }
  0x5f   :  { %v239_v55 = vadd.f32 %v237_v47, %v204_v33  ;;  %v244_v56 = vadd.f32 %v242_v48, %v209_v37  ;;  %v255_v57 = vmul.f32 %v794_v18, %v253_v46  ;;  %v245_v58 = vadd.f32 %v243_v49, %v210_v38 }
  0x60   :  { %v250_v59 = vadd.f32 %v248_v51, %v215_v39  ;;  %v251_v60 = vadd.f32 %v249_v52, %v216_v41  ;;  %v256_v61 = vadd.f32 %v254_v53, %v221_v42  ;;  %v264_v62 = vstv %s920_s25  ;;  %s1058_s25 = sld [smem:[#allocation9 + $0x100]] }
  0x61   :  { %v270_v63 = vstv %s922_s26  ;;  %v276_v0 = vstv %s927_s1  ;;  %v282_v9 = vstv %s929_s28  ;;  %v265_v12 = vmul.f32 %v796_v19, %v264_v62  ;;  %s1060_s26 = sld [smem:[#allocation9 + $0x180]] }
  0x62   :  { %v266_v15 = vmul.f32 %v798_v20, %v264_v62  ;;  %v271_v1 = vmul.f32 %v796_v19, %v270_v63  ;;  %v272_v3 = vmul.f32 %v798_v20, %v270_v63  ;;  %v257_v18 = vadd.f32 %v255_v57, %v222_v44  ;;  %s1066_s1 = sld [smem:[#allocation9 + $0x200]] }
  0x63   :  { %v277_v4 = vmul.f32 %v796_v19, %v276_v0  ;;  %v278_v2 = vmul.f32 %v798_v20, %v276_v0  ;;  %v283_v6 = vmul.f32 %v796_v19, %v282_v9  ;;  %v267_v10 = vadd.f32 %v265_v12, %v232_v45 }
  0x64   :  { %v268_v11 = vadd.f32 %v266_v15, %v233_v50  ;;  %v273_v16 = vadd.f32 %v271_v1, %v238_v54  ;;  %v284_v17 = vmul.f32 %v798_v20, %v282_v9  ;;  %v274_v22 = vadd.f32 %v272_v3, %v239_v55 }
  0x65   :  { %v279_v23 = vadd.f32 %v277_v4, %v244_v56  ;;  %v280_v28 = vadd.f32 %v278_v2, %v245_v58  ;;  %v285_v29 = vadd.f32 %v283_v6, %v250_v59  ;;  %v288_v32 = vstv %s940_s29 }
  0x66   :  { %v299_v33 = vstv %s942_s30  ;;  %v305_v34 = vstv %s947_s6  ;;  %v311_v35 = vstv %s949_s7  ;;  %v289_v36 = vmul.f32 %v796_v19, %v288_v32  ;;  %s698_s7 = smov [#allocation11]  }
  0x67   :  { %v290_v37 = vmul.f32 %v798_v20, %v288_v32  ;;  %v300_v38 = vmul.f32 %v800_v21, %v299_v33  ;;  %v301_v39 = vmul.f32 %v806_v24, %v299_v33  ;;  %v286_v40 = vadd.f32 %v284_v17, %v251_v60 }
  0x68   :  { %v306_v41 = vmul.f32 %v800_v21, %v305_v34  ;;  %v307_v42 = vmul.f32 %v806_v24, %v305_v34  ;;  %v312_v19 = vmul.f32 %v800_v21, %v311_v35  ;;  %v291_v20 = vadd.f32 %v289_v36, %v256_v61 }
  0x69   :  { %v292_v44 = vadd.f32 %v290_v37, %v257_v18  ;;  %v302_v45 = vadd.f32 %v300_v38, %v267_v10  ;;  %v313_v7 = vmul.f32 %v806_v24, %v311_v35  ;;  %v303_v13 = vadd.f32 %v301_v39, %v268_v11 }
  0x6a   :  { %v308_v8 = vadd.f32 %v306_v41, %v273_v16  ;;  %v309_v46 = vadd.f32 %v307_v42, %v274_v22  ;;  %v314_v14 = vadd.f32 %v312_v19, %v279_v23  ;;  %v317_v47 = vstv %s960_s8  ;;  %s482_s8 = sshll.u32 %s698_s7, 4  ;;  %s483_s8 = int_to_ptr.vmem [resolvable:$true] %s482_s8 }
  0x6b   :  { %v323_v48 = vstv %s962_s9  ;;  %v334_v49 = vstv %s967_s10  ;;  %v340_v50 = vstv %s969_s11  ;;  %v318_v51 = vmul.f32 %v800_v21, %v317_v47  ;;  %s660_s3 = scalar_lea.vmem %s483_s8, 256  ;;  %p665_p10 = scmp.lt.s32.totalorder %s483_s8, %s483_s8 }
  0x6c   :  { %v319_v52 = vmul.f32 %v806_v24, %v317_v47  ;;  %v324_v53 = vmul.f32 %v800_v21, %v323_v48  ;;  %v325_v54 = vmul.f32 %v806_v24, %v323_v48  ;;  %v315_v55 = vadd.f32 %v313_v7, %v280_v28  ;;  %p661_p9 = scmp.ne.s32.totalorder %s483_s8, %s660_s3  ;;  %p666_p11 = scmp.lt.s32.totalorder %s660_s3, %s660_s3 }
  0x6d   :  { %v335_v56 = vmul.f32 %v808_v25, %v334_v49  ;;  %v336_v57 = vmul.f32 %v810_v26, %v334_v49  ;;  %v341_v58 = vmul.f32 %v808_v25, %v340_v50  ;;  %v320_v21 = vadd.f32 %v318_v51, %v285_v29 }
  0x6e   :  { %v321_v24 = vadd.f32 %v319_v52, %v286_v40  ;;  %v326_v59 = vadd.f32 %v324_v53, %v291_v20  ;;  %v342_v60 = vmul.f32 %v810_v26, %v340_v50  ;;  %v327_v61 = vadd.f32 %v325_v54, %v292_v44  ;;  %p667_p12 = por %p666_p11, %p665_p10 }
  0x6f   :  { %v337_v62 = vadd.f32 %v335_v56, %v302_v45  ;;  %v338_v63 = vadd.f32 %v336_v57, %v303_v13  ;;  %v343_v0 = vadd.f32 %v341_v58, %v308_v8  ;;  %v346_v9 = vstv %s980_s12 }
  0x70   :  { %v352_v12 = vstv %s982_s13  ;;  %v358_v15 = vstv %s987_s14  ;;  %v369_v1 = vstv %s989_s2  ;;  %v347_v3 = vmul.f32 %v808_v25, %v346_v9  ;;  %p668_p13 = pnand %p667_p12, %p661_p9 }
  0x71   :  { %v348_v18 = vmul.f32 %v810_v26, %v346_v9  ;;  %v353_v4 = vmul.f32 %v808_v25, %v352_v12  ;;  %v354_v2 = vmul.f32 %v810_v26, %v352_v12  ;;  %v344_v6 = vadd.f32 %v342_v60, %v309_v46 }
  0x72   :  { %v359_v10 = vmul.f32 %v808_v25, %v358_v15  ;;  %v360_v11 = vmul.f32 %v810_v26, %v358_v15  ;;  %v370_v16 = vmul.f32 %v812_v27, %v369_v1  ;;  %v349_v17 = vadd.f32 %v347_v3, %v314_v14 }
  0x73   :  { %v350_v22 = vadd.f32 %v348_v18, %v315_v55  ;;  %v355_v23 = vadd.f32 %v353_v4, %v320_v21  ;;  %v371_v28 = vmul.f32 %v816_v30, %v369_v1  ;;  %v356_v29 = vadd.f32 %v354_v2, %v321_v24 }
  0x74   :  { %v361_v32 = vadd.f32 %v359_v10, %v326_v59  ;;  %v362_v33 = vadd.f32 %v360_v11, %v327_v61  ;;  %v372_v34 = vadd.f32 %v370_v16, %v337_v62  ;;  %v375_v35 = vstv %s1000_s15 }
  0x75   :  { %v381_v25 = vstv %s1002_s16  ;;  %v387_v36 = vstv %s1007_s17  ;;  %v393_v37 = vstv %s1009_s18  ;;  %v376_v26 = vmul.f32 %v812_v27, %v375_v35 }
  0x76   :  { %v377_v38 = vmul.f32 %v816_v30, %v375_v35  ;;  %v382_v39 = vmul.f32 %v812_v27, %v381_v25  ;;  %v383_v40 = vmul.f32 %v816_v30, %v381_v25  ;;  %v373_v41 = vadd.f32 %v371_v28, %v338_v63 }
  0x77   :  { %v388_v42 = vmul.f32 %v812_v27, %v387_v36  ;;  %v389_v19 = vmul.f32 %v816_v30, %v387_v36  ;;  %v394_v20 = vmul.f32 %v812_v27, %v393_v37  ;;  %v378_v44 = vadd.f32 %v376_v26, %v343_v0 }
  0x78   :  { %v379_v45 = vadd.f32 %v377_v38, %v344_v6  ;;  %v384_v7 = vadd.f32 %v382_v39, %v349_v17  ;;  %v395_v13 = vmul.f32 %v816_v30, %v393_v37  ;;  %v385_v8 = vadd.f32 %v383_v40, %v350_v22 }
  0x79   :  { %v390_v46 = vadd.f32 %v388_v42, %v355_v23  ;;  %v391_v14 = vadd.f32 %v389_v19, %v356_v29  ;;  %v396_v47 = vadd.f32 %v394_v20, %v361_v32  ;;  %v404_v48 = vstv %s1020_s19 }
  0x7a   :  { %v410_v49 = vstv %s1022_s20  ;;  %v416_v50 = vstv %s1027_s21  ;;  %v422_v51 = vstv %s1029_s22  ;;  %v405_v27 = vmul.f32 %v818_v31, %v404_v48 }
  0x7b   :  { %v406_v52 = vmul.f32 %v838_v43, %v404_v48  ;;  %v411_v53 = vmul.f32 %v818_v31, %v410_v49  ;;  %v412_v30 = vmul.f32 %v838_v43, %v410_v49  ;;  %v417_v54 = vmul.f32 %v818_v31, %v416_v50 }
  0x7c   :  { %v418_v55 = vmul.f32 %v838_v43, %v416_v50  ;;  %v423_v56 = vmul.f32 %v818_v31, %v422_v51  ;;  %v424_v57 = vmul.f32 %v838_v43, %v422_v51  ;;  %v407_v58 = vadd.f32 %v405_v27, %v372_v34 }
  0x7d   :  { %v408_v21 = vadd.f32 %v406_v52, %v373_v41  ;;  %v413_v24 = vadd.f32 %v411_v53, %v378_v44  ;;  %v414_v59 = vadd.f32 %v412_v30, %v379_v45  ;;  %v397_v60 = vadd.f32 %v395_v13, %v362_v33 }
  0x7e   :  { %v419_v61 = vadd.f32 %v417_v54, %v384_v7  ;;  %v420_v62 = vadd.f32 %v418_v55, %v385_v8  ;;  %v425_v63 = vadd.f32 %v423_v56, %v390_v46  ;;  %v426_v0 = vadd.f32 %v424_v57, %v391_v14 }
  0x7f   :  { %v428_v9 = vstv %s1043_s23  ;;  %v433_v12 = vmax.f32 %v407_v58, 0.0  ;;  %v434_v15 = vmax.f32 %v408_v21, 0.0  ;;  %v435_v18 = vmax.f32 %v413_v24, 0.0 }
  0x80   :  { %v429_v1 = vmul.f32 %v818_v31, %v428_v9  ;;  %v430_v3 = vmul.f32 %v838_v43, %v428_v9  ;;  %v436_v4 = vmax.f32 %v414_v59, 0.0  ;;  %v437_v2 = vmax.f32 %v419_v61, 0.0 }
  0x81   :  { %v438_v6 = vmax.f32 %v420_v62, 0.0  ;;  %v439_v10 = vmax.f32 %v425_v63, 0.0  ;;  %v444_v11 = vstv %s1046_s24  ;;  %v440_v28 = vmax.f32 %v426_v0, 0.0 }
  0x82   :  { %v431_v16 = vadd.f32 %v429_v1, %v396_v47  ;;  %v432_v17 = vadd.f32 %v430_v3, %v397_v60  ;;  %v445_v22 = vmul.f32 %v444_v11, %v433_v12  ;;  %v446_v23 = vmul.f32 %v444_v11, %v434_v15 }
  0x83   :  { %v452_v29 = vstv %s1052_s4  ;;  %v458_v32 = vstv %s1058_s25  ;;  %v464_v33 = vstv %s1060_s26  ;;  %v470_v38 = vstv %s1066_s1 }
  0x84   :  { %v441_v34 = vmax.f32 %v431_v16, 0.0  ;;  %v442_v35 = vmax.f32 %v432_v17, 0.0  ;;  %v449_v31 = vadd.f32 %v448_v5, %v445_v22  ;;  %v450_v43 = vadd.f32 %v448_v5, %v446_v23 }
  0x85   :  { %v453_v25 = vmul.f32 %v452_v29, %v435_v18  ;;  %v454_v36 = vmul.f32 %v452_v29, %v436_v4  ;;  %v459_v37 = vmul.f32 %v458_v32, %v437_v2  ;;  %v460_v26 = vmul.f32 %v458_v32, %v438_v6 }
  0x86   :  { %v465_v41 = vmul.f32 %v464_v33, %v439_v10  ;;  %v466_v42 = vmul.f32 %v464_v33, %v440_v28  ;;  %v471_v44 = vmul.f32 %v470_v38, %v441_v34  ;;  %v472_v45 = vmul.f32 %v470_v38, %v442_v35 }
  0x87   :  { %v455_v39 = vadd.f32 %v453_v25, %v449_v31  ;;  %v456_v40 = vadd.f32 %v454_v36, %v450_v43 }
  0x89   :  { %v461_v19 = vadd.f32 %v459_v37, %v455_v39  ;;  %v462_v20 = vadd.f32 %v460_v26, %v456_v40 }
  0x8b   :  { %v467_v7 = vadd.f32 %v465_v41, %v461_v19  ;;  %v468_v13 = vadd.f32 %v466_v42, %v462_v20 }
  0x8d   :  { %v473_v8 = vadd.f32 %v471_v44, %v467_v7  ;;  %v474_v46 = vadd.f32 %v472_v45, %v468_v13 }
  0x8f   :  { %475 = vst [vmem:[#allocation11] sm:$0xff] %v473_v8  ;;  %476 = vst [vmem:[#allocation11 + $0x8] sm:$0xff] %v474_v46 }
  0x90   :  { %671 = shalt.err (!%p668_p13)
}
  0x91   :  { %s672_s11 = scalar_lea.hbm %s1104_s5, 256 }
  0x92   :  { %p673_p0 = scmp.ne.s32.totalorder %s1104_s5, %s672_s11  ;;  %p676_p1 = scmp.lt.u32.totalorder %s672_s11, %s1104_s5 }
  0x94   :  { %p678_p2 = pnand %p676_p1, %p673_p0 }
  0x96   :  { %681 = shalt.err (!%p678_p2)
}
  0x97   :  { %488 = dma.vmem_to_hbm [thread:$0]  %s483_s8, 256, %s1104_s5, [#allocation5], %s692_s27, %s692_s27, %s693_s0  }
  0x98   :  { %688 = dma.done.wait [#allocation5], 256  }
  0x99   :  { %689 = vsyncadd [#allocation5], 4294967040 }
  0x9a   :  { %492 = vsyncpa [#allocation4], 1 }
  0x9b   :  { %493 = vsyncpa [#allocation5], 1 }
  0x9c   :  { %494 = vsyncpa [#allocation6], 1 }
  0x9d   :  { %495 = vsyncpa [#allocation8], 1 }

</bundles_post_ra>
